<compile_context>
chip_gen: v7x
topology: tpu7x:2x2x1
jax: 0.10.0
libtpu: 0.0.40
codegen_flags: <defaults>
</compile_context>

<pallas_src>
import jax
import jax.numpy as jnp
import numpy as np
from jax.experimental import pallas as pl
from jax.experimental.pallas import tpu as pltpu

N_GCN = 3  # number of AggNet layers


def gcn_kernel(param_ref, bias_ref, x_ref, m_ref, w_ref, out_ref):
    # param_ref: SMEM (D,)      -- GCN.parameter (abs taken on the scalar path)
    # bias_ref : SMEM (1,)      -- pred.bias
    # x_ref    : VMEM (D, N, B) -- input, pre-transposed so (N, B) slices are lane-dense
    # m_ref    : VMEM (L, N, N) -- fused per-layer operators |p2_l|*adj + |p3_l|*diag(mask)
    # w_ref    : VMEM (N, 1)    -- pred.weight.T
    # out_ref  : VMEM (1, B)    -- prediction, batch along lanes (lane-dense store)
    D = x_ref.shape[0]
    n_layers = m_ref.shape[0]

    # Projection: h[n, b] = (1/D) * sum_d |param_d| * x[d, n, b]   (pure VPU FMAs)
    h = jnp.abs(param_ref[0]) * x_ref[0]
    for d in range(1, D):
        h = h + jnp.abs(param_ref[d]) * x_ref[d]
    h = h * (1.0 / D)                                     # (N, B)

    # AggNet layers: h <- leaky_relu(M_l @ h); scalar/mask work is pre-fused into M_l.
    for l in range(n_layers):
        m = jnp.dot(m_ref[l], h, preferred_element_type=jnp.float32)   # (N, B)
        h = jnp.where(m >= 0, m, 0.1 * m)                 # leaky_relu, negative_slope=0.1

    # Prediction head Linear(n_cell, 1): VPU multiply + sublane reduce -> (1, B).
    out_ref[...] = jnp.sum(h * w_ref[...], axis=0, keepdims=True) + bias_ref[0]


@jax.jit
def gcn_forward(x, edge, edge_weight, param, p2s, p3s, w, b):
    """x: (B, n_cell, dim_in) f32; edge: (2, E) int32; edge_weight: (E,) (unused, as in PyTorch)."""
    B, N, D = x.shape
    src, dst = edge[0], edge[1]

    # Glue (outside the kernel): row-normalized dense adjacency from the edge list via
    # one-hot matmuls instead of .at[].add scatters.
    oh_dst = jax.nn.one_hot(dst, N, dtype=jnp.float32)          # (E, N)
    oh_src = jax.nn.one_hot(src, N, dtype=jnp.float32)          # (E, N)
    A = oh_dst.T @ oh_src                                       # A[i, j] = #edges j -> i
    deg = jnp.sum(oh_dst, axis=0)                               # in-degree (message count)
    adj = A / jnp.maximum(deg, 1.0)[:, None]                    # scatter-mean as matmul
    mask = (deg > 0).astype(jnp.float32)                        # isolated nodes aggregate to 0

    # Fuse per-layer scalar/mask elementwise work into the adjacency:
    #   M_l = |p2_l| * adj + |p3_l| * diag(mask)  ->  layer = leaky_relu(M_l @ h)
    # VMEM cost: N_GCN * N * N * 4 bytes (trivial at N=16; re-budget for large n_cell on v7x).
    M = (jnp.abs(p2s).reshape(-1, 1, 1) * adj[None, :, :]
         + jnp.abs(p3s).reshape(-1, 1, 1) * jnp.diag(mask)[None, :, :])   # (N_GCN, N, N)

    x_t = jnp.transpose(x, (2, 1, 0))                           # (D, N, B): batch in lanes
    param1d = param.reshape(D)                                  # flat 1-D SMEM scalars
    bias1d = b.reshape(1)
    w_col = w.reshape(N, 1)

    # TODO(synk): edge_weight accepted but unused -- AggNet.message() ignores it in PyTorch too.
    # TODO(synk): at large B / n_cell, add a batch grid axis ("parallel", feeds v7x's 2 TCs),
    #             cast M/h to bf16 for the MXU on v6e/v7x, and re-budget VMEM (64 MiB on v7x).
    vmem = lambda: pl.BlockSpec(memory_space=pltpu.MemorySpace.VMEM)
    smem = lambda: pl.BlockSpec(memory_space=pltpu.MemorySpace.SMEM)
    out_row = pl.pallas_call(
        gcn_kernel,
        out_shape=jax.ShapeDtypeStruct((1, B), jnp.float32),    # lane-dense: batch in lanes
        in_specs=[smem(), smem(), vmem(), vmem(), vmem()],
        out_specs=vmem(),
    )(param1d, bias1d, x_t, M, w_col)
    return out_row.T                                            # (B, 1), matching nn.Linear output


def ref_forward(x, edge, param, p2s, p3s, w, b):
    """Pure-JAX reference mirroring the PyTorch/PyG semantics (scatter-mean)."""
    B, N, D = x.shape
    h = jnp.swapaxes(x @ jnp.abs(param), 0, 1)[..., 0] / D          # (N, B)
    src, dst = edge[0], edge[1]
    for l in range(N_GCN):
        msg = jnp.abs(p2s[l, 0]) * h[src] + jnp.abs(p3s[l, 0]) * h[dst]   # (E, B)
        s = jnp.zeros((N, B), jnp.float32).at[dst].add(msg)
        cnt = jnp.zeros((N,), jnp.float32).at[dst].add(1.0)
        out = s / jnp.maximum(cnt, 1.0)[:, None]
        h = jnp.where(out >= 0, out, 0.1 * out)
    return h.T @ w + b[None, :]                                     # (B, 1)


if __name__ == "__main__":
    B, n_cell, dim_in, E = 8, 16, 4, 48
    k = jax.random.split(jax.random.PRNGKey(0), 8)

    # inputs
    x = jax.random.normal(k[0], (B, n_cell, dim_in), jnp.float32)
    edge = jax.random.randint(k[1], (2, E), 0, n_cell, jnp.int32)
    edge_weight = jax.random.uniform(k[2], (E,), jnp.float32)

    # parameters (same shapes as the PyTorch __init__)
    param = jax.random.uniform(k[3], (dim_in, 1), jnp.float32)      # GCN.parameter
    p2s = jax.random.uniform(k[4], (N_GCN, 1), jnp.float32)         # AggNet.parameter2 per layer
    p3s = jax.random.uniform(k[5], (N_GCN, 1), jnp.float32)         # AggNet.parameter3 per layer
    bound = 1.0 / np.sqrt(n_cell)
    w = jax.random.uniform(k[6], (n_cell, 1), jnp.float32, -bound, bound)  # pred.weight.T
    b = jax.random.uniform(k[7], (1,), jnp.float32, -bound, bound)         # pred.bias

    out = jax.block_until_ready(gcn_forward(x, edge, edge_weight, param, p2s, p3s, w, b))

    ref = ref_forward(x, edge, param, p2s, p3s, w, b)
    np.testing.assert_allclose(np.asarray(out), np.asarray(ref), rtol=1e-2, atol=1e-3)
    print("KERNEL_OK")
</pallas_src>

<mosaic_0001>
module attributes {stable_mosaic.version = 11 : i64} {
  func.func @gcn_kernel(%arg0: memref<4xf32, #tpu.memory_space<smem>>, %arg1: memref<1xf32, #tpu.memory_space<smem>>, %arg2: memref<4x16x8xf32, #tpu.memory_space<vmem>>, %arg3: memref<3x16x16xf32, #tpu.memory_space<vmem>>, %arg4: memref<16x1xf32, #tpu.memory_space<vmem>>, %arg5: memref<1x8xf32, #tpu.memory_space<vmem>>) attributes {dimension_semantics = [], scalar_prefetch = 0 : i64, scratch_operands = 0 : i64, tpu.core_type = #tpu.core_type<tc>} {
    %c0 = arith.constant 0 : index
    %0 = memref.load %arg0[%c0] : memref<4xf32, #tpu.memory_space<smem>>
    %1 = math.absf %0 : f32
    %c0_0 = arith.constant 0 : index
    %c0_1 = arith.constant 0 : index
    %c0_2 = arith.constant 0 : index
    %2 = vector.load %arg2[%c0_0, %c0_1, %c0_2] : memref<4x16x8xf32, #tpu.memory_space<vmem>>, vector<1x16x8xf32>
    %3 = vector.shape_cast %2 : vector<1x16x8xf32> to vector<16x8xf32>
    %4 = vector.broadcast %1 : f32 to vector<16x8xf32>
    %5 = arith.mulf %4, %3 : vector<16x8xf32>
    %c1 = arith.constant 1 : index
    %6 = memref.load %arg0[%c1] : memref<4xf32, #tpu.memory_space<smem>>
    %7 = math.absf %6 : f32
    %c1_3 = arith.constant 1 : index
    %c0_4 = arith.constant 0 : index
    %c0_5 = arith.constant 0 : index
    %8 = vector.load %arg2[%c1_3, %c0_4, %c0_5] : memref<4x16x8xf32, #tpu.memory_space<vmem>>, vector<1x16x8xf32>
    %9 = vector.shape_cast %8 : vector<1x16x8xf32> to vector<16x8xf32>
    %10 = vector.broadcast %7 : f32 to vector<16x8xf32>
    %11 = arith.mulf %10, %9 : vector<16x8xf32>
    %12 = arith.addf %5, %11 : vector<16x8xf32>
    %c2 = arith.constant 2 : index
    %13 = memref.load %arg0[%c2] : memref<4xf32, #tpu.memory_space<smem>>
    %14 = math.absf %13 : f32
    %c2_6 = arith.constant 2 : index
    %c0_7 = arith.constant 0 : index
    %c0_8 = arith.constant 0 : index
    %15 = vector.load %arg2[%c2_6, %c0_7, %c0_8] : memref<4x16x8xf32, #tpu.memory_space<vmem>>, vector<1x16x8xf32>
    %16 = vector.shape_cast %15 : vector<1x16x8xf32> to vector<16x8xf32>
    %17 = vector.broadcast %14 : f32 to vector<16x8xf32>
    %18 = arith.mulf %17, %16 : vector<16x8xf32>
    %19 = arith.addf %12, %18 : vector<16x8xf32>
    %c3 = arith.constant 3 : index
    %20 = memref.load %arg0[%c3] : memref<4xf32, #tpu.memory_space<smem>>
    %21 = math.absf %20 : f32
    %c3_9 = arith.constant 3 : index
    %c0_10 = arith.constant 0 : index
    %c0_11 = arith.constant 0 : index
    %22 = vector.load %arg2[%c3_9, %c0_10, %c0_11] : memref<4x16x8xf32, #tpu.memory_space<vmem>>, vector<1x16x8xf32>
    %23 = vector.shape_cast %22 : vector<1x16x8xf32> to vector<16x8xf32>
    %24 = vector.broadcast %21 : f32 to vector<16x8xf32>
    %25 = arith.mulf %24, %23 : vector<16x8xf32>
    %26 = arith.addf %19, %25 : vector<16x8xf32>
    %cst = arith.constant 2.500000e-01 : f32
    %27 = vector.broadcast %cst : f32 to vector<16x8xf32>
    %28 = arith.mulf %26, %27 : vector<16x8xf32>
    %c0_12 = arith.constant 0 : index
    %c0_13 = arith.constant 0 : index
    %c0_14 = arith.constant 0 : index
    %29 = vector.load %arg3[%c0_12, %c0_13, %c0_14] : memref<3x16x16xf32, #tpu.memory_space<vmem>>, vector<1x16x16xf32>
    %30 = vector.shape_cast %29 : vector<1x16x16xf32> to vector<16x16xf32>
    %cst_15 = arith.constant dense<0.000000e+00> : vector<16x8xf32>
    %31 = tpu.matmul %30, %28, %cst_15 {dimension_numbers = #tpu.dot_dimension_numbers<[1], [0], [0], [1], [0, 0, 1, 1], [], []>} : vector<16x16xf32>, vector<16x8xf32>, vector<16x8xf32> -> vector<16x8xf32>
    %cst_16 = arith.constant 0.000000e+00 : f32
    %32 = vector.broadcast %cst_16 : f32 to vector<16x8xf32>
    %33 = arith.cmpf oge, %31, %32 : vector<16x8xf32>
    %cst_17 = arith.constant 1.000000e-01 : f32
    %34 = vector.broadcast %cst_17 : f32 to vector<16x8xf32>
    %35 = arith.mulf %34, %31 : vector<16x8xf32>
    %36 = arith.select %33, %31, %35 : vector<16x8xi1>, vector<16x8xf32>
    %c1_18 = arith.constant 1 : index
    %c0_19 = arith.constant 0 : index
    %c0_20 = arith.constant 0 : index
    %37 = vector.load %arg3[%c1_18, %c0_19, %c0_20] : memref<3x16x16xf32, #tpu.memory_space<vmem>>, vector<1x16x16xf32>
    %38 = vector.shape_cast %37 : vector<1x16x16xf32> to vector<16x16xf32>
    %cst_21 = arith.constant dense<0.000000e+00> : vector<16x8xf32>
    %39 = tpu.matmul %38, %36, %cst_21 {dimension_numbers = #tpu.dot_dimension_numbers<[1], [0], [0], [1], [0, 0, 1, 1], [], []>} : vector<16x16xf32>, vector<16x8xf32>, vector<16x8xf32> -> vector<16x8xf32>
    %cst_22 = arith.constant 0.000000e+00 : f32
    %40 = vector.broadcast %cst_22 : f32 to vector<16x8xf32>
    %41 = arith.cmpf oge, %39, %40 : vector<16x8xf32>
    %cst_23 = arith.constant 1.000000e-01 : f32
    %42 = vector.broadcast %cst_23 : f32 to vector<16x8xf32>
    %43 = arith.mulf %42, %39 : vector<16x8xf32>
    %44 = arith.select %41, %39, %43 : vector<16x8xi1>, vector<16x8xf32>
    %c2_24 = arith.constant 2 : index
    %c0_25 = arith.constant 0 : index
    %c0_26 = arith.constant 0 : index
    %45 = vector.load %arg3[%c2_24, %c0_25, %c0_26] : memref<3x16x16xf32, #tpu.memory_space<vmem>>, vector<1x16x16xf32>
    %46 = vector.shape_cast %45 : vector<1x16x16xf32> to vector<16x16xf32>
    %cst_27 = arith.constant dense<0.000000e+00> : vector<16x8xf32>
    %47 = tpu.matmul %46, %44, %cst_27 {dimension_numbers = #tpu.dot_dimension_numbers<[1], [0], [0], [1], [0, 0, 1, 1], [], []>} : vector<16x16xf32>, vector<16x8xf32>, vector<16x8xf32> -> vector<16x8xf32>
    %cst_28 = arith.constant 0.000000e+00 : f32
    %48 = vector.broadcast %cst_28 : f32 to vector<16x8xf32>
    %49 = arith.cmpf oge, %47, %48 : vector<16x8xf32>
    %cst_29 = arith.constant 1.000000e-01 : f32
    %50 = vector.broadcast %cst_29 : f32 to vector<16x8xf32>
    %51 = arith.mulf %50, %47 : vector<16x8xf32>
    %52 = arith.select %49, %47, %51 : vector<16x8xi1>, vector<16x8xf32>
    %c0_30 = arith.constant 0 : index
    %c0_31 = arith.constant 0 : index
    %53 = vector.load %arg4[%c0_30, %c0_31] : memref<16x1xf32, #tpu.memory_space<vmem>>, vector<16x1xf32>
    %54 = vector.broadcast %53 : vector<16x1xf32> to vector<16x8xf32>
    %55 = arith.mulf %52, %54 : vector<16x8xf32>
    %cst_32 = arith.constant dense<0.000000e+00> : vector<8xf32>
    %56 = vector.multi_reduction <add>, %55, %cst_32 [0] : vector<16x8xf32> to vector<8xf32>
    %57 = vector.shape_cast %56 : vector<8xf32> to vector<1x8xf32>
    %c0_33 = arith.constant 0 : index
    %58 = memref.load %arg1[%c0_33] : memref<1xf32, #tpu.memory_space<smem>>
    %59 = vector.broadcast %58 : f32 to vector<1x8xf32>
    %60 = arith.addf %57, %59 : vector<1x8xf32>
    %c0_34 = arith.constant 0 : index
    %c0_35 = arith.constant 0 : index
    %61 = vector.load %arg5[%c0_34, %c0_35] : memref<1x8xf32, #tpu.memory_space<vmem>>, vector<1x8xf32>
    tpu.vector_store %arg5[%c0_34, %c0_35], %60 {strides = array<i32>} : memref<1x8xf32, #tpu.memory_space<vmem>>, vector<1x8xf32>,
    return
  }
}

</mosaic_0001>

<bundles_post_ra>
// kernel: gcn_forward.1
= control target key start
LH: loop header
LB: loop body
LE: loop exit
PB: predicated region body
PF: predicated region fallthrough
CT: control target
= control target key end

     0   :  { %11 = vsyncpa [#allocation5], 0  ;;  %s599_s0 = inlined_call_operand.vmem [shape: f32[4], index: 0, kind: input, shape index: {}]   ;;  %s600_s1 = inlined_call_operand.<no memory space> [shape: f32[1], index: 1, kind: input, shape index: {}]   ;;  %s601_s2 = inlined_call_operand.vmem [shape: f32[4,16,8], index: 2, kind: input, shape index: {}]   ;;  %s602_s3 = inlined_call_operand.vmem [shape: f32[3,16,16], index: 3, kind: input, shape index: {}]   ;;  %s603_s4 = inlined_call_operand.vmem [shape: f32[16,1], index: 4, kind: input, shape index: {}]   ;;  %s604_s5 = inlined_call_operand.hbm [shape: f32[1,8], index: 5, kind: output, shape index: {}]  }
   0x1   :  { %12 = vsyncpa [#allocation4], 0  ;;  %s19_s20 = sshll.u32 %s599_s0, 4  ;;  %s20_s20 = int_to_ptr.vmem [resolvable:$true] %s19_s20 }
   0x2   :  { %s456_s21 = scalar_lea.vmem %s20_s20, 16  ;;  %p461_p1 = scmp.lt.s32.totalorder %s20_s20, %s20_s20 }
   0x3   :  { %p457_p0 = scmp.ne.s32.totalorder %s20_s20, %s456_s21  ;;  %p462_p2 = scmp.lt.s32.totalorder %s456_s21, %s456_s21 }
   0x5   :  { %p463_p3 = por %p462_p2, %p461_p1 }
   0x7   :  { %p464_p4 = pnand %p463_p3, %p457_p0 }
   0x9   :  { %467 = shalt.err (!%p464_p4)
}
   0xa   :  { %s494_s22 = smov [#allocation3]  }
   0xb   :  { %22 = dma.vmem_to_smem %s20_s20, 16, %s494_s22, [#allocation5]  }
   0xc   :  { %490 = dma.done.wait [#allocation5], 16  }
   0xd   :  { %491 = vsyncadd [#allocation5], 4294967280 }
   0xe   :  { %34 = sfence }
   0xf   :  { %s35_s23 = sld [smem:[#allocation3]]  ;;  %s388_s24 = sld [smem:[#allocation3 + $0x1]]  ;;  %vm76_vm0 = vcmask 130048   ;;  %v74_v0 = vld [vmem:[%s602_s3] sm:$0xff]  ;;  %v38_v2 = vld [vmem:[%s601_s2 + $0x8] sm:$0xff]  ;;  %v389_v3 = vld [vmem:[%s601_s2 + $0x10] sm:$0xff] }
  0x10   :  { %s391_s25 = sld [smem:[#allocation3 + $0x2]]  ;;  %s394_s26 = sld [smem:[#allocation3 + $0x3]]  ;;  %v37_v1 = vld [vmem:[%s601_s2] sm:$0xff]  ;;  %423 = vmatprep.mubr.msk.f32.mxu0 %vm76_vm0, %v74_v0  ;;  %v390_v4 = vld [vmem:[%s601_s2 + $0x18] sm:$0xff]  ;;  %v393_v8 = vld [vmem:[%s601_s2 + $0x28] sm:$0xff]  ;;  %v495_v42 = vmov 0  }
  0x11   :  { %v392_v7 = vld [vmem:[%s601_s2 + $0x20] sm:$0xff]  ;;  %v395_v13 = vld [vmem:[%s601_s2 + $0x30] sm:$0xff]  ;;  %v396_v14 = vld [vmem:[%s601_s2 + $0x38] sm:$0xff]  ;;  %455 = vset.pattern.permute.xlu0 %v495_v42  ;;  %vm358_vm7 = vcmask 64512   ;;  %s496_s10 = smov [#allocation6]   ;;  %vm371_vm8 = vcmask 57344  }
  0x12   :  { %v75_v30 = vld [vmem:[%s602_s3 + $0x8] sm:$0xff]  ;;  %v399_v31 = vld [vmem:[%s602_s3 + $0x10] sm:$0xff]  ;;  %v400_v39 = vld [vmem:[%s602_s3 + $0x18] sm:$0xff] }
  0x13   :  { %430 = vmatprep.mubr.msk.f32.mxu1 %vm76_vm0, %v399_v31  ;;  %v403_v40 = vld [vmem:[%s602_s3 + $0x20] sm:$0xff]  ;;  %v345_v43 = vld [vmem:[%s603_s4 + $0x8] sm:$0xff] }
  0x14   :  { %v344_v41 = vld [vmem:[%s603_s4] sm:$0xff]  ;;  %v404_v51 = vld [vmem:[%s602_s3 + $0x28] sm:$0xff] }
  0x15   :  { %s36_s11 = sand.u32 2147483647, %s35_s23  ;;  %s43_s12 = sand.u32 2147483647, %s388_s24  ;;  %348 = vperm.xlu0 %455, %v344_v41  }
  0x16   :  { %v39_v5 = vstv %s36_s11  ;;  %v47_v6 = vstv %s43_s12  ;;  %s53_s13 = sand.u32 2147483647, %s391_s25  ;;  %s63_s18 = sand.u32 2147483647, %s394_s26 }
  0x17   :  { %v40_v9 = vmul.f32 %v39_v5, %v37_v1  ;;  %v41_v10 = vmul.f32 %v39_v5, %v38_v2  ;;  %v48_v11 = vmul.f32 %v389_v3, %v47_v6  ;;  %v49_v12 = vmul.f32 %v390_v4, %v47_v6  ;;  %s379_s11 = sshll.u32 %s496_s10, 4  ;;  %s380_s11 = int_to_ptr.vmem [resolvable:$true] %s379_s11 }
  0x18   :  { %v57_v15 = vstv %s53_s13  ;;  %v67_v16 = vstv %s63_s18  ;;  %v369_v6 = vstv %s600_s1  ;;  %s468_s12 = scalar_lea.vmem %s380_s11, 16  ;;  %s472_s13 = scalar_lea.vmem %s380_s11, 32 }
  0x19   :  { %v50_v17 = vadd.f32 %v48_v11, %v40_v9  ;;  %v51_v18 = vadd.f32 %v49_v12, %v41_v10  ;;  %v58_v19 = vmul.f32 %v392_v7, %v57_v15  ;;  %v59_v20 = vmul.f32 %v393_v8, %v57_v15  ;;  %353 = vperm.xlu0 %455, %v345_v43   ;;  %p469_p5 = scmp.ne.s32.totalorder %s380_s11, %s468_s12  ;;  %p473_p6 = scmp.lt.s32.totalorder %s380_s11, %s380_s11 }
  0x1a   :  { %v68_v21 = vmul.f32 %v395_v13, %v67_v16  ;;  %v69_v22 = vmul.f32 %v396_v14, %v67_v16  ;;  %p474_p7 = scmp.lt.s32.totalorder %s472_s13, %s468_s12 }
  0x1b   :  { %v60_v23 = vadd.f32 %v58_v19, %v50_v17  ;;  %v61_v24 = vadd.f32 %v59_v20, %v51_v18 }
  0x1c   :  { %p475_p8 = por %p474_p7, %p473_p6 }
  0x1d   :  { %v70_v25 = vadd.f32 %v68_v21, %v60_v23  ;;  %v71_v26 = vadd.f32 %v69_v22, %v61_v24 }
  0x1e   :  { %p476_p9 = pnand %p475_p8, %p469_p5 }
  0x1f   :  { %v72_v27 = vmul.f32 0.25, %v70_v25  ;;  %v73_v28 = vmul.f32 0.25, %v71_v26 }
  0x21   :  { %v440_v29 = vpack.c.bf16 %v73_v28, %v72_v27 }
  0x23   :  { %441 = vmatprep.subr.bf16.mxu0 %v440_v29 }
  0x24   :  { %443 = vmatpush3.bf16.msra.mxu0 %v440_v29 }
  0x27   :  { %424 = vmatmul.mubr.msk.f32.vlgmr.msra.gmra.mrb[0].mxu0 %vm76_vm0, %v75_v30 }
  0x28   :  { %437 = vmatprep.mubr.msk.f32.mxu0 %vm76_vm0, %v403_v40 }
  0x94   :  { %v349_v52 = vpop.permute.xlu0 %348 }
  0x98   :  { %v354_v57 = vpop.permute.xlu0 %353 }
  0xfa   :  { %v425_v32 = vpop.f32.mrb[0].mxu0 }
  0xfb   :  { %vm159_vm1 = vcmp.ge.f32.partialorder %v425_v32, 0.0  ;;  %v161_v33 = vmul.f32 0.1, %v425_v32  ;;  %v149_v34 = vpop.f32.mrb[1].mxu0 }
  0xfc   :  { %vm158_vm2 = vcmp.ge.f32.partialorder %v149_v34, 0.0  ;;  %v160_v35 = vmul.f32 0.1, %v149_v34 }
  0xfd   :  { %v163_v36 = vsel %vm159_vm1, %v425_v32, %v161_v33 }
  0xfe   :  { %v162_v37 = vsel %vm158_vm2, %v149_v34, %v160_v35 }
  0xff   :  { %v444_v38 = vpack.c.bf16 %v163_v36, %v162_v37 }
 0x101   :  { %445 = vmatprep.subr.bf16.mxu1 %v444_v38 }
 0x102   :  { %447 = vmatpush3.bf16.msra.mxu1 %v444_v38 }
 0x105   :  { %431 = vmatmul.mubr.msk.f32.vlgmr.msra.gmra.mrb[0].mxu1 %vm76_vm0, %v400_v39 }
 0x1d8   :  { %v432_v44 = vpop.f32.mrb[0].mxu1 }
 0x1d9   :  { %vm249_vm3 = vcmp.ge.f32.partialorder %v432_v44, 0.0  ;;  %v251_v45 = vmul.f32 0.1, %v432_v44  ;;  %v239_v46 = vpop.f32.mrb[1].mxu1 }
 0x1da   :  { %vm248_vm4 = vcmp.ge.f32.partialorder %v239_v46, 0.0  ;;  %v250_v47 = vmul.f32 0.1, %v239_v46 }
 0x1db   :  { %v253_v48 = vsel %vm249_vm3, %v432_v44, %v251_v45 }
 0x1dc   :  { %v252_v49 = vsel %vm248_vm4, %v239_v46, %v250_v47 }
 0x1dd   :  { %v448_v50 = vpack.c.bf16 %v253_v48, %v252_v49 }
 0x1df   :  { %449 = vmatprep.subr.bf16.mxu0 %v448_v50 }
 0x1e0   :  { %451 = vmatpush3.bf16.msra.mxu0 %v448_v50 }
 0x1e3   :  { %438 = vmatmul.mubr.msk.f32.vlgmr.msra.gmra.mrb[2].mxu0 %vm76_vm0, %v404_v51 }
 0x2b6   :  { %v439_v53 = vpop.f32.mrb[2].mxu0 }
 0x2b7   :  { %vm339_vm5 = vcmp.ge.f32.partialorder %v439_v53, 0.0  ;;  %v341_v54 = vmul.f32 0.1, %v439_v53  ;;  %v329_v55 = vpop.f32.mrb[3].mxu0 }
 0x2b8   :  { %vm338_vm6 = vcmp.ge.f32.partialorder %v329_v55, 0.0  ;;  %v340_v56 = vmul.f32 0.1, %v329_v55 }
 0x2b9   :  { %v343_v58 = vsel %vm339_vm5, %v439_v53, %v341_v54 }
 0x2ba   :  { %v357_v59 = vmul.f32 %v354_v57, %v343_v58  ;;  %v342_v60 = vsel %vm338_vm6, %v329_v55, %v340_v56 }
 0x2bb   :  { %v356_v61 = vmul.f32 %v349_v52, %v342_v60 }
 0x2bc   :  { %v360_v62 = vsel %vm358_vm7, %v357_v59, 0.0 }
 0x2bd   :  { %v359_v63 = vsel %vm358_vm7, %v356_v61, 0.0 }
 0x2be   :  { %v361_v0 = vadd.f32 %v360_v62, %v359_v63 }
 0x2c0   :  { %v362_v1 = vrot.slane %v361_v0, 4 }
 0x2c2   :  { %v363_v2 = vadd.f32 %v362_v1, %v361_v0 }
 0x2c4   :  { %v364_v3 = vrot.slane %v363_v2, 2 }
 0x2c6   :  { %v365_v4 = vadd.f32 %v364_v3, %v363_v2 }
 0x2c8   :  { %v366_v5 = vrot.slane %v365_v4, 1 }
 0x2ca   :  { %v367_v7 = vadd.f32 %v366_v5, %v365_v4 }
 0x2cc   :  { %v370_v8 = vadd.f32 %v369_v6, %v367_v7 }
 0x2ce   :  { %372 = vst.msk [vmem:[#allocation6] sm:$0x1] %vm371_vm8, %v370_v8 }
 0x2cf   :  { %479 = shalt.err (!%p476_p9)
}
 0x2d0   :  { %s480_s16 = scalar_lea.hbm %s604_s5, 16 }
 0x2d1   :  { %p481_p10 = scmp.ne.s32.totalorder %s604_s5, %s480_s16  ;;  %p484_p11 = scmp.lt.u32.totalorder %s480_s16, %s604_s5 }
 0x2d3   :  { %p486_p12 = pnand %p484_p11, %p481_p10 }
 0x2d5   :  { %489 = shalt.err (!%p486_p12)
}
 0x2d6   :  { %382 = dma.vmem_to_hbm [thread:$0]  %s380_s11, 16, %s604_s5, [#allocation4]  }
 0x2d7   :  { %492 = dma.done.wait [#allocation4], 16  }
 0x2d8   :  { %493 = vsyncadd [#allocation4], 4294967280 }
 0x2d9   :  { %386 = vsyncpa [#allocation4], 1 }
 0x2da   :  { %387 = vsyncpa [#allocation5], 1 }

</bundles_post_ra>
